<compile_context>
chip_gen: v6e
topology: v6e:2x2x1
jax: 0.10.0
libtpu: 0.0.40
codegen_flags: <defaults>
</compile_context>

<pallas_src>
import functools

import jax
import jax.numpy as jnp
from jax.experimental import pallas as pl
from jax.experimental.pallas import tpu as pltpu


def _round_up(x, m):
    return ((x + m - 1) // m) * m


def _pick_tile(extent, unit, cap):
    """Choose a tile for one dim.  Returns (tile, padded_extent).

    Preference order:
      1. extent <= cap: use the full extent as the block (a block dim equal to
         the full array dim is exempt from the (8,128) rule) -> no padding.
      2. the largest multiple-of-`unit` divisor of the unit-aligned extent that
         is <= cap and not pathologically small -> pad only to unit alignment.
      3. fall back to `cap` and pad the extent up to a multiple of it.
    """
    if extent <= cap:
        return extent, extent
    aligned = _round_up(extent, unit)
    cap = max(unit, (min(cap, aligned) // unit) * unit)
    t = cap
    while t >= unit and t * 4 >= cap:
        if aligned % t == 0:
            return t, aligned
        t -= unit
    return cap, _round_up(extent, cap)


def _make_matmul_kernel(has_bias, use_scratch):
    """Kernel factory: out = a @ b (+ bias), f32 accumulation over the K grid axis."""

    def kernel(*refs):
        if use_scratch:
            *io_refs, acc_ref = refs
        else:
            io_refs = refs
        if has_bias:
            a_ref, b_ref, bias_ref, o_ref = io_refs
        else:
            a_ref, b_ref, o_ref = io_refs
        acc = acc_ref if use_scratch else o_ref  # f32 output: accumulate in place

        k = pl.program_id(2)

        @pl.when(k == 0)
        def _():
            acc[...] = jnp.zeros_like(acc)

        acc[...] += jnp.dot(a_ref[...], b_ref[...],
                            preferred_element_type=jnp.float32)

        if has_bias or use_scratch:
            @pl.when(k == pl.num_programs(2) - 1)
            def _():
                r = acc[...]
                if has_bias:
                    r = r + bias_ref[...]
                o_ref[...] = r.astype(o_ref.dtype)

    return kernel


def _tiled_matmul(a, b, bias=None, *, out_dtype=None, tm=512, tn=256, tk=512):
    """out = a @ b (+ bias), tiled over a 3-D (M, N, K) grid on the MXU.

    Operands may be bf16 (recommended); accumulation is always f32.  Tiles are
    clamped / chosen so that padding copies are avoided whenever possible.
    """
    M, K = a.shape
    K2, N = b.shape
    assert K == K2, (a.shape, b.shape)
    out_dtype = a.dtype if out_dtype is None else jnp.dtype(out_dtype)

    # M sits on the sublane axis (unit 8); K and N on the lane axis (unit 128).
    tm, Mp = _pick_tile(M, 8, tm)
    tk, Kp = _pick_tile(K, 128, tk)
    tn, Np = _pick_tile(N, 128, tn)

    if (Mp, Kp) != (M, K):
        a = jnp.pad(a, ((0, Mp - M), (0, Kp - K)))
    if (Kp, Np) != (K, N):
        b = jnp.pad(b, ((0, Kp - K), (0, Np - N)))

    grid = (Mp // tm, Np // tn, Kp // tk)

    in_specs = [
        pl.BlockSpec((tm, tk), lambda i, j, k: (i, k)),
        pl.BlockSpec((tk, tn), lambda i, j, k: (k, j)),
    ]
    args = [a, b]
    has_bias = bias is not None
    if has_bias:
        bias_p = bias.astype(jnp.float32)
        if Np != N:
            bias_p = jnp.pad(bias_p, (0, Np - N))
        args.append(bias_p.reshape(1, Np))
        in_specs.append(pl.BlockSpec((1, tn), lambda i, j, k: (0, j)))

    # f32 outputs accumulate directly into the K-resident output block; keep a
    # separate f32 scratch accumulator only for narrow output dtypes.
    use_scratch = out_dtype != jnp.dtype(jnp.float32)
    scratch_shapes = [pltpu.VMEM((tm, tn), jnp.float32)] if use_scratch else []

    # Double-buffered working-set estimate -> explicit scoped-VMEM budget.
    ws = 2 * (tm * tk * a.dtype.itemsize + tk * tn * b.dtype.itemsize
              + tm * tn * out_dtype.itemsize) + tm * tn * 4
    vmem_limit = int(min(48 * 1024 * 1024, max(32 * 1024 * 1024, 2 * ws)))

    cost = pl.CostEstimate(
        flops=2 * Mp * Np * Kp,
        transcendentals=0,
        bytes_accessed=(Mp * Kp * a.dtype.itemsize
                        + Kp * Np * b.dtype.itemsize
                        + Mp * Np * out_dtype.itemsize),
    )

    out = pl.pallas_call(
        _make_matmul_kernel(has_bias, use_scratch),
        out_shape=jax.ShapeDtypeStruct((Mp, Np), out_dtype),
        grid_spec=pltpu.PrefetchScalarGridSpec(
            num_scalar_prefetch=0,
            grid=grid,
            in_specs=in_specs,
            out_specs=pl.BlockSpec((tm, tn), lambda i, j, k: (i, j)),
            scratch_shapes=scratch_shapes,
        ),
        compiler_params=pltpu.CompilerParams(
            dimension_semantics=("parallel", "parallel", "arbitrary"),
            vmem_limit_bytes=vmem_limit,
        ),
        cost_estimate=cost,
    )(*args)

    if (Mp, Np) != (M, N):
        out = out[:M, :N]
    return out


@functools.partial(jax.jit, static_argnames=())
def graph_convolution_forward(x, adj, weight, bias=None):
    """Pallas equivalent of GraphConvolution.forward:
        support = x @ weight
        output  = adj @ support (+ bias)

    x:      (num_nodes, in_features)    float32
    adj:    (num_nodes, num_nodes)      float32 (dense adjacency)
    weight: (in_features, out_features) float32 (module convention, no .T)
    bias:   (out_features,) or None
    """
    # bf16 operands (HBM-bound matmuls -> ~2x traffic cut, native MXU path);
    # all accumulation / bias-add stays f32, final output is f32.
    x_bf = x.astype(jnp.bfloat16)
    w_bf = weight.astype(jnp.bfloat16)
    adj_bf = adj.astype(jnp.bfloat16)

    # support = x @ W, emitted in bf16 so the (larger) adj matmul reads half
    # the bytes; f32 VMEM scratch accumulator inside the kernel.
    support = _tiled_matmul(x_bf, w_bf, out_dtype=jnp.bfloat16,
                            tm=512, tn=256, tk=512)

    # output = adj @ support (+ bias), f32 result, big M/K tiles.
    # TODO(synk): torch.sparse.mm takes a sparse adjacency; a scalar-prefetch
    # block-sparse path (skip all-zero adj tiles via PrefetchScalarGridSpec)
    # would cut HBM traffic by the graph sparsity; adj is treated as dense here.
    bias_f32 = None if bias is None else bias.astype(jnp.float32)
    return _tiled_matmul(adj_bf, support, bias=bias_f32, out_dtype=jnp.float32,
                         tm=1024, tn=256, tk=1024)


def init_graph_convolution(key, in_features, out_features, bias=True):
    """Matches GraphConvolution.__init__: xavier_normal_ weight, zero bias."""
    std = (2.0 / (in_features + out_features)) ** 0.5  # xavier normal, gain=1
    weight = std * jax.random.normal(
        key, (in_features, out_features), dtype=jnp.float32)
    b = jnp.zeros((out_features,), dtype=jnp.float32) if bias else None
    return weight, b


if __name__ == "__main__":
    key = jax.random.PRNGKey(0)
    k_x, k_adj, k_w, k_b = jax.random.split(key, 4)

    num_nodes, in_features, out_features = 16, 32, 16
    x = jax.random.normal(k_x, (num_nodes, in_features), dtype=jnp.float32)

    # Simple symmetric, row-normalized dense adjacency with self-loops.
    a = (jax.random.uniform(k_adj, (num_nodes, num_nodes)) > 0.5).astype(
        jnp.float32)
    adj = a + a.T + jnp.eye(num_nodes, dtype=jnp.float32)
    adj = adj / jnp.sum(adj, axis=1, keepdims=True)

    weight, bias = init_graph_convolution(k_w, in_features, out_features)
    # Module init fills bias with 0; use a nonzero bias here so the in-kernel
    # bias-add path is actually exercised by the numeric check.
    bias = 0.1 * jax.random.normal(k_b, (out_features,), dtype=jnp.float32)

    out = jax.block_until_ready(graph_convolution_forward(x, adj, weight, bias))

    # Reference mirroring the kernel's bf16 operand casts (f32 accumulation).
    xb = x.astype(jnp.bfloat16).astype(jnp.float32)
    wb = weight.astype(jnp.bfloat16).astype(jnp.float32)
    ab = adj.astype(jnp.bfloat16).astype(jnp.float32)
    sb = (xb @ wb).astype(jnp.bfloat16).astype(jnp.float32)
    ref_bf16 = ab @ sb + bias
    # Pure-f32 module reference (loose tolerance: bf16 operands by design).
    ref_f32 = adj @ (x @ weight) + bias

    assert out.shape == (num_nodes, out_features)
    assert out.dtype == jnp.float32
    assert jnp.allclose(out, ref_bf16, atol=1e-3, rtol=1e-3), float(
        jnp.max(jnp.abs(out - ref_bf16)))
    assert jnp.allclose(out, ref_f32, atol=5e-2, rtol=5e-2), float(
        jnp.max(jnp.abs(out - ref_f32)))

    print("KERNEL_OK")
</pallas_src>

<mosaic_0001>
module attributes {stable_mosaic.version = 11 : i64} {
  func.func @kernel(%arg0: i32, %arg1: i32, %arg2: i32, %arg3: memref<16x32xbf16, #tpu.memory_space<vmem>>, %arg4: memref<32x16xbf16, #tpu.memory_space<vmem>>, %arg5: memref<16x16xbf16, #tpu.memory_space<vmem>>, %arg6: memref<16x16xf32, #tpu.memory_space<vmem>>) attributes {dimension_semantics = [#tpu.dimension_semantics<parallel>, #tpu.dimension_semantics<parallel>, #tpu.dimension_semantics<arbitrary>], iteration_bounds = array<i64: 1, 1, 1>, scalar_prefetch = 0 : i64, scratch_operands = 1 : i64, tpu.core_type = #tpu.core_type<tc>, window_params = [{transform_indices = @transform_0, window_bounds = array<i64: 16, 32>}, {transform_indices = @transform_1, window_bounds = array<i64: 32, 16>}, {transform_indices = @transform_2, window_bounds = array<i64: 16, 16>}]} {
    %c0_i32 = arith.constant 0 : i32
    %0 = arith.cmpi eq, %arg2, %c0_i32 : i32
    %1 = arith.extui %0 : i1 to i32
    %c0_i32_0 = arith.constant 0 : i32
    %2 = arith.cmpi ne, %1, %c0_i32_0 : i32
    scf.if %2 {
      %cst_10 = arith.constant 0.000000e+00 : f32
      %12 = vector.broadcast %cst_10 : f32 to vector<16x16xf32>
      %c0_11 = arith.constant 0 : index
      %c0_12 = arith.constant 0 : index
      %13 = vector.load %arg6[%c0_11, %c0_12] : memref<16x16xf32, #tpu.memory_space<vmem>>, vector<16x16xf32>
      tpu.vector_store %arg6[%c0_11, %c0_12], %12 {strides = array<i32>} : memref<16x16xf32, #tpu.memory_space<vmem>>, vector<16x16xf32>,
    } else {
    }
    %c0 = arith.constant 0 : index
    %c0_1 = arith.constant 0 : index
    %3 = vector.load %arg6[%c0, %c0_1] : memref<16x16xf32, #tpu.memory_space<vmem>>, vector<16x16xf32>
    %c0_2 = arith.constant 0 : index
    %c0_3 = arith.constant 0 : index
    %4 = vector.load %arg3[%c0_2, %c0_3] : memref<16x32xbf16, #tpu.memory_space<vmem>>, vector<16x32xbf16>
    %c0_4 = arith.constant 0 : index
    %c0_5 = arith.constant 0 : index
    %5 = vector.load %arg4[%c0_4, %c0_5] : memref<32x16xbf16, #tpu.memory_space<vmem>>, vector<32x16xbf16>
    %cst = arith.constant dense<0.000000e+00> : vector<16x16xf32>
    %6 = tpu.matmul %4, %5, %cst {dimension_numbers = #tpu.dot_dimension_numbers<[1], [0], [0], [1], [0, 0, 1, 1], [], []>} : vector<16x32xbf16>, vector<32x16xbf16>, vector<16x16xf32> -> vector<16x16xf32>
    %7 = arith.addf %3, %6 : vector<16x16xf32>
    %c0_6 = arith.constant 0 : index
    %c0_7 = arith.constant 0 : index
    %8 = vector.load %arg6[%c0_6, %c0_7] : memref<16x16xf32, #tpu.memory_space<vmem>>, vector<16x16xf32>
    tpu.vector_store %arg6[%c0_6, %c0_7], %7 {strides = array<i32>} : memref<16x16xf32, #tpu.memory_space<vmem>>, vector<16x16xf32>,
    %c0_i32_8 = arith.constant 0 : i32
    %9 = arith.cmpi eq, %arg2, %c0_i32_8 : i32
    %10 = arith.extui %9 : i1 to i32
    %c0_i32_9 = arith.constant 0 : i32
    %11 = arith.cmpi ne, %10, %c0_i32_9 : i32
    scf.if %11 {
      %c0_10 = arith.constant 0 : index
      %c0_11 = arith.constant 0 : index
      %12 = vector.load %arg6[%c0_10, %c0_11] : memref<16x16xf32, #tpu.memory_space<vmem>>, vector<16x16xf32>
      %13 = arith.truncf %12 : vector<16x16xf32> to vector<16x16xbf16>
      %c0_12 = arith.constant 0 : index
      %c0_13 = arith.constant 0 : index
      %14 = vector.load %arg5[%c0_12, %c0_13] : memref<16x16xbf16, #tpu.memory_space<vmem>>, vector<16x16xbf16>
      tpu.vector_store %arg5[%c0_12, %c0_13], %13 {strides = array<i32>} : memref<16x16xbf16, #tpu.memory_space<vmem>>, vector<16x16xbf16>,
    } else {
    }
    return
  }
  func.func @transform_0(%arg0: i32, %arg1: i32, %arg2: i32) -> (i32, i32) {
    %c0_i32 = arith.constant 0 : i32
    return %arg0, %arg2 : i32, i32
  }
  func.func @transform_1(%arg0: i32, %arg1: i32, %arg2: i32) -> (i32, i32) {
    %c0_i32 = arith.constant 0 : i32
    return %arg2, %arg1 : i32, i32
  }
  func.func @transform_2(%arg0: i32, %arg1: i32, %arg2: i32) -> (i32, i32) {
    %c0_i32 = arith.constant 0 : i32
    return %arg0, %arg1 : i32, i32
  }
}

module attributes {stable_mosaic.version = 11 : i64} {
  func.func @kernel(%arg0: i32, %arg1: i32, %arg2: i32, %arg3: memref<16x16xbf16, #tpu.memory_space<vmem>>, %arg4: memref<16x16xbf16, #tpu.memory_space<vmem>>, %arg5: memref<1x16xf32, #tpu.memory_space<vmem>>, %arg6: memref<16x16xf32, #tpu.memory_space<vmem>>) attributes {dimension_semantics = [#tpu.dimension_semantics<parallel>, #tpu.dimension_semantics<parallel>, #tpu.dimension_semantics<arbitrary>], iteration_bounds = array<i64: 1, 1, 1>, scalar_prefetch = 0 : i64, scratch_operands = 0 : i64, tpu.core_type = #tpu.core_type<tc>, window_params = [{transform_indices = @transform_0, window_bounds = array<i64: 16, 16>}, {transform_indices = @transform_1, window_bounds = array<i64: 16, 16>}, {transform_indices = @transform_2, window_bounds = array<i64: 1, 16>}, {transform_indices = @transform_3, window_bounds = array<i64: 16, 16>}]} {
    %c0_i32 = arith.constant 0 : i32
    %0 = arith.cmpi eq, %arg2, %c0_i32 : i32
    %1 = arith.extui %0 : i1 to i32
    %c0_i32_0 = arith.constant 0 : i32
    %2 = arith.cmpi ne, %1, %c0_i32_0 : i32
    scf.if %2 {
      %cst_10 = arith.constant 0.000000e+00 : f32
      %12 = vector.broadcast %cst_10 : f32 to vector<16x16xf32>
      %c0_11 = arith.constant 0 : index
      %c0_12 = arith.constant 0 : index
      %13 = vector.load %arg6[%c0_11, %c0_12] : memref<16x16xf32, #tpu.memory_space<vmem>>, vector<16x16xf32>
      tpu.vector_store %arg6[%c0_11, %c0_12], %12 {strides = array<i32>} : memref<16x16xf32, #tpu.memory_space<vmem>>, vector<16x16xf32>,
    } else {
    }
    %c0 = arith.constant 0 : index
    %c0_1 = arith.constant 0 : index
    %3 = vector.load %arg6[%c0, %c0_1] : memref<16x16xf32, #tpu.memory_space<vmem>>, vector<16x16xf32>
    %c0_2 = arith.constant 0 : index
    %c0_3 = arith.constant 0 : index
    %4 = vector.load %arg3[%c0_2, %c0_3] : memref<16x16xbf16, #tpu.memory_space<vmem>>, vector<16x16xbf16>
    %c0_4 = arith.constant 0 : index
    %c0_5 = arith.constant 0 : index
    %5 = vector.load %arg4[%c0_4, %c0_5] : memref<16x16xbf16, #tpu.memory_space<vmem>>, vector<16x16xbf16>
    %cst = arith.constant dense<0.000000e+00> : vector<16x16xf32>
    %6 = tpu.matmul %4, %5, %cst {dimension_numbers = #tpu.dot_dimension_numbers<[1], [0], [0], [1], [0, 0, 1, 1], [], []>} : vector<16x16xbf16>, vector<16x16xbf16>, vector<16x16xf32> -> vector<16x16xf32>
    %7 = arith.addf %3, %6 : vector<16x16xf32>
    %c0_6 = arith.constant 0 : index
    %c0_7 = arith.constant 0 : index
    %8 = vector.load %arg6[%c0_6, %c0_7] : memref<16x16xf32, #tpu.memory_space<vmem>>, vector<16x16xf32>
    tpu.vector_store %arg6[%c0_6, %c0_7], %7 {strides = array<i32>} : memref<16x16xf32, #tpu.memory_space<vmem>>, vector<16x16xf32>,
    %c0_i32_8 = arith.constant 0 : i32
    %9 = arith.cmpi eq, %arg2, %c0_i32_8 : i32
    %10 = arith.extui %9 : i1 to i32
    %c0_i32_9 = arith.constant 0 : i32
    %11 = arith.cmpi ne, %10, %c0_i32_9 : i32
    scf.if %11 {
      %c0_10 = arith.constant 0 : index
      %c0_11 = arith.constant 0 : index
      %12 = vector.load %arg6[%c0_10, %c0_11] : memref<16x16xf32, #tpu.memory_space<vmem>>, vector<16x16xf32>
      %c0_12 = arith.constant 0 : index
      %c0_13 = arith.constant 0 : index
      %13 = vector.load %arg5[%c0_12, %c0_13] : memref<1x16xf32, #tpu.memory_space<vmem>>, vector<1x16xf32>
      %14 = vector.broadcast %13 : vector<1x16xf32> to vector<16x16xf32>
      %15 = arith.addf %12, %14 : vector<16x16xf32>
      %c0_14 = arith.constant 0 : index
      %c0_15 = arith.constant 0 : index
      %16 = vector.load %arg6[%c0_14, %c0_15] : memref<16x16xf32, #tpu.memory_space<vmem>>, vector<16x16xf32>
      tpu.vector_store %arg6[%c0_14, %c0_15], %15 {strides = array<i32>} : memref<16x16xf32, #tpu.memory_space<vmem>>, vector<16x16xf32>,
    } else {
    }
    return
  }
  func.func @transform_0(%arg0: i32, %arg1: i32, %arg2: i32) -> (i32, i32) {
    %c0_i32 = arith.constant 0 : i32
    return %arg0, %arg2 : i32, i32
  }
  func.func @transform_1(%arg0: i32, %arg1: i32, %arg2: i32) -> (i32, i32) {
    %c0_i32 = arith.constant 0 : i32
    return %arg2, %arg1 : i32, i32
  }
  func.func @transform_2(%arg0: i32, %arg1: i32, %arg2: i32) -> (i32, i32) {
    %c0_i32 = arith.constant 0 : i32
    %c0_i32_0 = arith.constant 0 : i32
    return %c0_i32, %arg1 : i32, i32
  }
  func.func @transform_3(%arg0: i32, %arg1: i32, %arg2: i32) -> (i32, i32) {
    %c0_i32 = arith.constant 0 : i32
    return %arg0, %arg1 : i32, i32
  }
}

</mosaic_0001>

<bundles_post_ra>
// kernel: graph_convolution_forward.3
= control target key start
LH: loop header
LB: loop body
LE: loop exit
PB: predicated region body
PF: predicated region fallthrough
CT: control target
= control target key end

     0   :  { %vm20_vm0 = vcmask 130048   ;;  %v162_v0 = vmov 0.0   ;;  %vm163_vm1 = vmmov 0   ;;  %s206_s0 = inlined_call_operand.vmem [shape: bf16[16,16], index: 0, kind: input, shape index: {}]   ;;  %s207_s1 = inlined_call_operand.vmem [shape: bf16[16,16], index: 1, kind: input, shape index: {}]   ;;  %s208_s2 = inlined_call_operand.vmem [shape: f32[1,16], index: 2, kind: input, shape index: {}]   ;;  %s209_s3 = inlined_call_operand.hbm [shape: f32[16,16], index: 3, kind: output, shape index: {}]  }
   0x1   :  { %21 = vst.msk [vmem:[#allocation2] sm:$0xff] %vm20_vm0, %v162_v0  ;;  %22 = vst.msk [vmem:[#allocation2 + $0x8] sm:$0xff] %vm20_vm0, %v162_v0  ;;  %127 = vmatprep.subr.bf16.mxu0 %v162_v0  ;;  %v138_v1 = vld [vmem:[%s207_s1] sm:$0xff]   ;;  %129 = vmatprep.mubr.msk.bf16.mxu0 %vm163_vm1, %v162_v0 }
   0x2   :  { %v139_v2 = vld [vmem:[%s206_s0] sm:$0xff]  }
   0x3   :  { %8 = vsyncpa [#allocation3], 0  ;;  %128 = vmatpush3.bf16.msra.mxu0 %v138_v1  ;;  %v124_v11 = vld [vmem:[%s208_s2] ss:$0 sm:$0xff]  ;;  %s164_s0 = smov [#allocation2]  }
   0x4   :  { %s110_s17 = sshll.u32 %s164_s0, 4  ;;  %s111_s17 = int_to_ptr.vmem [resolvable:$true] %s110_s17 }
   0x5   :  { %s140_s18 = scalar_lea.vmem %s111_s17, 256  ;;  %p145_p1 = scmp.lt.s32.totalorder %s111_s17, %s111_s17 }
   0x6   :  { %130 = vmatmul.mubr.msk.bf16.vlgmr.msra.gmra.mxu0 %vm20_vm0, %v139_v2  ;;  %p141_p0 = scmp.ne.s32.totalorder %s111_s17, %s140_s18  ;;  %p146_p2 = scmp.lt.s32.totalorder %s140_s18, %s140_s18 }
   0x8   :  { %v23_v3 = vld [vmem:[#allocation2] sm:$0xff]  ;;  %v24_v7 = vld [vmem:[#allocation2 + $0x8] sm:$0xff]  ;;  %p147_p3 = por %p146_p2, %p145_p1 }
   0xa   :  { %p148_p4 = pnand %p147_p3, %p141_p0 }
  0xc6   :  { %v78_v4 = vpop.f32.mrf.mxu0 }
  0xc7   :  { %v85_v5 = vadd.f32 %v78_v4, %v23_v3 }
  0xc8   :  { %v131_v6 = vpop.f32.mrf.mxu0 }
  0xc9   :  { %87 = vst.msk [vmem:[#allocation2] sm:$0xff] %vm20_vm0, %v85_v5 }
  0xca   :  { %v81_v8 = vpop.f32.mrf.mxu0 }
  0xcb   :  { %v86_v9 = vadd.f32 %v81_v8, %v24_v7 }
  0xcc   :  { %v132_v10 = vpop.f32.mrf.mxu0 }
  0xcd   :  { %88 = vst.msk [vmem:[#allocation2 + $0x8] sm:$0xff] %vm20_vm0, %v86_v9 }
  0xd0   :  { %v92_v12 = vld [vmem:[#allocation2] sm:$0xff] }
  0xd1   :  { %v101_v13 = vadd.f32 %v124_v11, %v92_v12 }
  0xd3   :  { %103 = vst.msk [vmem:[#allocation2] sm:$0xff] %vm20_vm0, %v101_v13 }
  0xd4   :  { %v93_v14 = vld [vmem:[#allocation2 + $0x8] sm:$0xff] }
  0xd5   :  { %v102_v15 = vadd.f32 %v124_v11, %v93_v14 }
  0xd7   :  { %104 = vst.msk [vmem:[#allocation2 + $0x8] sm:$0xff] %vm20_vm0, %v102_v15 }
  0xd8   :  { %151 = shalt.err (!%p148_p4)
}
  0xd9   :  { %s165_s19 = smov 128   ;;  %s166_s2 = smov 8  }
  0xda   :  { %116 = dma.vmem_to_hbm [thread:$0]  %s111_s17, 256, %s209_s3, [#allocation3], %s165_s19, %s165_s19, %s166_s2  }
  0xdb   :  { %160 = dma.done.wait [#allocation3], 256  }
  0xdc   :  { %161 = vsyncadd [#allocation3], 4294967040 }
  0xdd   :  { %120 = vsyncpa [#allocation3], 1 }

// kernel: graph_convolution_forward.2
= control target key start
LH: loop header
LB: loop body
LE: loop exit
PB: predicated region body
PF: predicated region fallthrough
CT: control target
= control target key end

     0   :  { %vm16_vm0 = vcmask 130048   ;;  %v138_v0 = vmov 0.0   ;;  %vm139_vm1 = vmmov 0   ;;  %vm44_vm2 = vcmask 261120   ;;  %s174_s1 = inlined_call_operand.vmem [shape: bf16[32,16], index: 1, kind: input, shape index: {}]   ;;  %s175_s0 = inlined_call_operand.vmem [shape: bf16[16,32], index: 0, kind: input, shape index: {}]   ;;  %s176_s2 = inlined_call_operand.vmem [shape: bf16[16,16], index: 2, kind: output, shape index: {}]  }
   0x1   :  { %125 = vmatprep.subr.bf16.mxu0 %v138_v0  ;;  %v135_v1 = vld [vmem:[%s174_s1 + $0x8] sm:$0xff]   ;;  %129 = vmatprep.mubr.msk.bf16.mxu0 %vm139_vm1, %v138_v0  ;;  %17 = vst.msk [vmem:[#allocation2] sm:$0xff] %vm16_vm0, %v138_v0  ;;  %18 = vst.msk [vmem:[#allocation2 + $0x8] sm:$0xff] %vm16_vm0, %v138_v0  ;;  %v136_v2 = vld [vmem:[%s174_s1] sm:$0xff]   ;;  %vm107_vm3 = vcmask 125952  }
   0x2   :  { %126 = vmatpush3.bf16.msra.mxu0 %v135_v1  ;;  %v137_v3 = vld [vmem:[%s175_s0] sm:$0xff]  }
   0x3   :  { %127 = vmatprep.subr.bf16.mxu0 %v138_v0 }
   0x6   :  { %128 = vmatpush3.bf16.msra.mxu0 %v136_v2 }
   0x8   :  { %v19_v4 = vld [vmem:[#allocation2] sm:$0xff]  ;;  %v20_v8 = vld [vmem:[#allocation2 + $0x8] sm:$0xff] }
   0x9   :  { %130 = vmatmul.mubr.msk.bf16.vlgmr.msra.gmra.mxu0 %vm44_vm2, %v137_v3 }
  0xc9   :  { %v82_v5 = vpop.f32.mrf.mxu0 }
  0xca   :  { %v89_v6 = vadd.f32 %v82_v5, %v19_v4 }
  0xcb   :  { %v131_v7 = vpop.f32.mrf.mxu0 }
  0xcc   :  { %92 = vst.msk [vmem:[#allocation2] sm:$0xff] %vm16_vm0, %v89_v6 }
  0xcd   :  { %v85_v9 = vpop.f32.mrf.mxu0 }
  0xce   :  { %v90_v10 = vadd.f32 %v85_v9, %v20_v8 }
  0xcf   :  { %v132_v11 = vpop.f32.mrf.mxu0 }
  0xd0   :  { %93 = vst.msk [vmem:[#allocation2 + $0x8] sm:$0xff] %vm16_vm0, %v90_v10 }
  0xd3   :  { %v97_v12 = vld [vmem:[#allocation2] sm:$0xff] }
  0xd4   :  { %v120_v13 = vpack.c.bf16 %v97_v12, %v97_v12 }
  0xd6   :  { %108 = vst.msk [vmem:[%s176_s2] sm:$0xf] %vm107_vm3, %v120_v13 }
  0xd7   :  { %v98_v14 = vld [vmem:[#allocation2 + $0x8] sm:$0xff] }
  0xd8   :  { %v121_v15 = vpack.c.bf16 %v98_v14, %v98_v14 }
  0xda   :  { %109 = vst.msk [vmem:[%s176_s2 + $0x4] sm:$0xf] %vm107_vm3, %v121_v15 }

</bundles_post_ra>
